<compile_context>
chip_gen: v5e
topology: v5e:2x2
jax: 0.10.0
libtpu: 0.0.40
codegen_flags: <defaults>
</compile_context>

<pallas_src>
import functools
import math

import jax
import jax.numpy as jnp
from jax.experimental import pallas as pl
from jax.experimental.pallas import tpu as pltpu


def _round_up(x, m):
    return ((x + m - 1) // m) * m


def _embed_kernel(ids_ref, emb_hbm, o_ref, buf, sem, *, seq_tile, s_pad, scale):
    """Gather `seq_tile` embedding rows for one (batch, seq-tile) grid step.

    ids_ref : SMEM, (batch * s_pad,) int32 token ids (scalar-prefetched)
    emb_hbm : HBM,  (vocab, d_model) embedding table (manual DMA gather)
    o_ref   : VMEM, (1, seq_tile, d_model) output block
    buf     : VMEM scratch, (seq_tile, d_model) gather landing buffer
    sem     : DMA semaphores, (seq_tile,)
    """
    b = pl.program_id(0)
    st = pl.program_id(1)
    base = b * s_pad + st * seq_tile

    # Issue all row-gather DMAs for this tile; they run concurrently.
    @pl.loop(0, seq_tile)
    def _issue(t):
        row = ids_ref[base + t]
        pltpu.make_async_copy(emb_hbm.at[row], buf.at[t], sem.at[t]).start()

    # Wait for all of them (shape of the wait descriptor matches the start).
    @pl.loop(0, seq_tile)
    def _wait(t):
        pltpu.make_async_copy(emb_hbm.at[0], buf.at[t], sem.at[t]).wait()

    # Fused scale-by-sqrt(d_model): f32 math, constant multiply, one lane-dense store.
    o_ref[0] = (buf[...].astype(jnp.float32) * jnp.float32(scale)).astype(o_ref.dtype)


def input_embeddings(ids, emb_table, *, seq_tile=None):
    """InputEmbeddings forward: emb_table[ids] * sqrt(d_model).

    Args:
      ids:       (batch, seq_len) integer token ids.
      emb_table: (vocab_size, d_model) embedding weights.
      seq_tile:  optional tokens gathered per grid step (defaults to <=128,
                 multiple of 8).

    Returns:
      (batch, seq_len, d_model) scaled embeddings, dtype of `emb_table`.
    """
    B, S = ids.shape
    V, D = emb_table.shape

    if seq_tile is None:
        # Amortize per-grid-step overhead; keep per-step VMEM modest
        # (buf + double-buffered out block ~= 3 * seq_tile * D * itemsize).
        seq_tile = min(128, _round_up(S, 8))
    s_pad = _round_up(S, seq_tile)

    ids32 = ids.astype(jnp.int32)
    if s_pad != S:
        # Pad with token 0 (a valid row); padded rows are sliced off below.
        ids32 = jnp.pad(ids32, ((0, 0), (0, s_pad - S)))
    ids_flat = ids32.reshape(B * s_pad)  # 1-D => compact SMEM layout

    scale = math.sqrt(float(D))  # torch: np.sqrt(self.d_model), d_model == D

    kernel = functools.partial(
        _embed_kernel, seq_tile=seq_tile, s_pad=s_pad, scale=scale
    )

    out = pl.pallas_call(
        kernel,
        out_shape=jax.ShapeDtypeStruct((B, s_pad, D), emb_table.dtype),
        grid_spec=pltpu.PrefetchScalarGridSpec(
            num_scalar_prefetch=1,
            grid=(B, s_pad // seq_tile),
            in_specs=[pl.BlockSpec(memory_space=pl.ANY)],  # table stays in HBM
            out_specs=pl.BlockSpec((1, seq_tile, D), lambda b, st, ids: (b, st, 0)),
            scratch_shapes=[
                pltpu.VMEM((seq_tile, D), emb_table.dtype),
                pltpu.SemaphoreType.DMA((seq_tile,)),
            ],
        ),
        compiler_params=pltpu.CompilerParams(
            dimension_semantics=("parallel", "parallel"),
        ),
    )(ids_flat, emb_table)

    if s_pad != S:
        out = out[:, :S, :]
    return out


if __name__ == "__main__":
    # Small deterministic example: batch=2, seq_len=8, vocab=512, d_model=128
    # (d_model kept a multiple of 128 so output stores are lane-dense).
    B, S, V, D = 2, 8, 512, 128
    key = jax.random.PRNGKey(0)
    k_ids, k_emb, k_ids2 = jax.random.split(key, 3)
    ids = jax.random.randint(k_ids, (B, S), 0, V, dtype=jnp.int32)
    emb = jax.random.normal(k_emb, (V, D), dtype=jnp.float32)

    out = input_embeddings(ids, emb)
    jax.block_until_ready(out)

    ref = emb[ids] * jnp.float32(math.sqrt(D))
    assert out.shape == (B, S, D)
    assert jnp.allclose(out, ref, atol=1e-6, rtol=1e-6), "embedding mismatch"

    # Non-multiple-of-8 seq_len exercises the pad-and-slice path.
    S2 = 5
    ids2 = jax.random.randint(k_ids2, (B, S2), 0, V, dtype=jnp.int32)
    out2 = input_embeddings(ids2, emb)
    jax.block_until_ready(out2)
    ref2 = emb[ids2] * jnp.float32(math.sqrt(D))
    assert out2.shape == (B, S2, D)
    assert jnp.allclose(out2, ref2, atol=1e-6, rtol=1e-6), "embedding mismatch (ragged)"

    print("KERNEL_OK")
</pallas_src>

<mosaic_0001>
module attributes {stable_mosaic.version = 11 : i64} {
  func.func @_embed_kernel(%arg0: i32, %arg1: i32, %arg2: memref<16xi32, #tpu.memory_space<smem>>, %arg3: memref<512x128xf32, #tpu.memory_space<any>>, %arg4: memref<1x8x128xf32, #tpu.memory_space<vmem>>, %arg5: memref<8x128xf32, #tpu.memory_space<vmem>>, %arg6: memref<8x!tpu.dma_semaphore, #tpu.memory_space<semaphore_mem>>) attributes {dimension_semantics = [#tpu.dimension_semantics<parallel>, #tpu.dimension_semantics<parallel>], iteration_bounds = array<i64: 2, 1>, scalar_prefetch = 1 : i64, scratch_operands = 2 : i64, tpu.core_type = #tpu.core_type<tc>, window_params = [{}, {transform_indices = @transform_1, window_bounds = array<i64: 1, 8, 128>}]} {
    %c8_i32 = arith.constant 8 : i32
    %0 = arith.muli %arg0, %c8_i32 : i32
    %c8_i32_0 = arith.constant 8 : i32
    %1 = arith.muli %arg1, %c8_i32_0 : i32
    %2 = arith.addi %0, %1 : i32
    %c0_i32 = arith.constant 0 : i32
    %c8_i32_1 = arith.constant 8 : i32
    %3 = arith.addi %c0_i32, %c8_i32_1 : i32
    %c1_i32 = arith.constant 1 : i32
    scf.for %arg7 = %c0_i32 to %3 step %c1_i32  : i32 {
      %c1_i32_11 = arith.constant 1 : i32
      %11 = arith.muli %arg7, %c1_i32_11 : i32
      %c0_i32_12 = arith.constant 0 : i32
      %12 = arith.addi %c0_i32_12, %11 : i32
      %13 = arith.addi %2, %12 : i32
      %14 = arith.index_cast %13 : i32 to index
      %15 = memref.load %arg2[%14] : memref<16xi32, #tpu.memory_space<smem>>
      %c0_i32_13 = arith.constant 0 : i32
      %16 = tpu.memref_slice %arg3[%15, %c0_i32_13] : memref<512x128xf32, #tpu.memory_space<any>> -> memref<1x128xf32, #tpu.memory_space<any>>
      %17 = tpu.memref_squeeze %16 : memref<1x128xf32, #tpu.memory_space<any>> -> memref<128xf32, #tpu.memory_space<any>>
      %c0_i32_14 = arith.constant 0 : i32
      %18 = tpu.memref_slice %arg5[%12, %c0_i32_14] : memref<8x128xf32, #tpu.memory_space<vmem>> -> memref<1x128xf32, #tpu.memory_space<vmem>>
      %19 = tpu.memref_squeeze %18 : memref<1x128xf32, #tpu.memory_space<vmem>> -> memref<128xf32, #tpu.memory_space<vmem>>
      %20 = tpu.memref_slice %arg6[%12] : memref<8x!tpu.dma_semaphore, #tpu.memory_space<semaphore_mem>> -> memref<1x!tpu.dma_semaphore, #tpu.memory_space<semaphore_mem>>
      %21 = tpu.memref_squeeze %20 : memref<1x!tpu.dma_semaphore, #tpu.memory_space<semaphore_mem>> -> memref<!tpu.dma_semaphore, #tpu.memory_space<semaphore_mem>>
      tpu.enqueue_dma source(%17 : memref<128xf32, #tpu.memory_space<any>>) target(%19 : memref<128xf32, #tpu.memory_space<vmem>>) target_semaphore(%21 : memref<!tpu.dma_semaphore, #tpu.memory_space<semaphore_mem>>)
    }
    %c8_i32_2 = arith.constant 8 : i32
    %c0_i32_3 = arith.constant 0 : i32
    %c8_i32_4 = arith.constant 8 : i32
    %4 = arith.addi %c0_i32_3, %c8_i32_4 : i32
    %c1_i32_5 = arith.constant 1 : i32
    scf.for %arg7 = %c0_i32_3 to %4 step %c1_i32_5  : i32 {
      %c1_i32_11 = arith.constant 1 : i32
      %11 = arith.muli %arg7, %c1_i32_11 : i32
      %c0_i32_12 = arith.constant 0 : i32
      %12 = arith.addi %c0_i32_12, %11 : i32
      %c0_i32_13 = arith.constant 0 : i32
      %c0_i32_14 = arith.constant 0 : i32
      %13 = tpu.memref_slice %arg3[%c0_i32_13, %c0_i32_14] : memref<512x128xf32, #tpu.memory_space<any>> -> memref<1x128xf32, #tpu.memory_space<any>>
      %14 = tpu.memref_squeeze %13 : memref<1x128xf32, #tpu.memory_space<any>> -> memref<128xf32, #tpu.memory_space<any>>
      %c0_i32_15 = arith.constant 0 : i32
      %15 = tpu.memref_slice %arg5[%12, %c0_i32_15] : memref<8x128xf32, #tpu.memory_space<vmem>> -> memref<1x128xf32, #tpu.memory_space<vmem>>
      %16 = tpu.memref_squeeze %15 : memref<1x128xf32, #tpu.memory_space<vmem>> -> memref<128xf32, #tpu.memory_space<vmem>>
      %17 = tpu.memref_slice %arg6[%12] : memref<8x!tpu.dma_semaphore, #tpu.memory_space<semaphore_mem>> -> memref<1x!tpu.dma_semaphore, #tpu.memory_space<semaphore_mem>>
      %18 = tpu.memref_squeeze %17 : memref<1x!tpu.dma_semaphore, #tpu.memory_space<semaphore_mem>> -> memref<!tpu.dma_semaphore, #tpu.memory_space<semaphore_mem>>
      tpu.wait_dma2 semaphore(%18 : memref<!tpu.dma_semaphore, #tpu.memory_space<semaphore_mem>>) src(%14 : memref<128xf32, #tpu.memory_space<any>>) dst(%16 : memref<128xf32, #tpu.memory_space<vmem>>)
    }
    %c8_i32_6 = arith.constant 8 : i32
    %c0 = arith.constant 0 : index
    %c0_7 = arith.constant 0 : index
    %5 = vector.load %arg5[%c0, %c0_7] : memref<8x128xf32, #tpu.memory_space<vmem>>, vector<8x128xf32>
    %cst = arith.constant 11.3137083 : f32
    %6 = vector.broadcast %cst : f32 to vector<8x128xf32>
    %7 = arith.mulf %5, %6 : vector<8x128xf32>
    %c0_8 = arith.constant 0 : index
    %c0_9 = arith.constant 0 : index
    %c0_10 = arith.constant 0 : index
    %8 = vector.load %arg4[%c0_8, %c0_9, %c0_10] : memref<1x8x128xf32, #tpu.memory_space<vmem>>, vector<1x8x128xf32>
    %9 = vector.shape_cast %8 : vector<1x8x128xf32> to vector<8x128xf32>
    %10 = vector.shape_cast %7 : vector<8x128xf32> to vector<1x8x128xf32>
    tpu.vector_store %arg4[%c0_8, %c0_9, %c0_10], %10 {strides = array<i32>} : memref<1x8x128xf32, #tpu.memory_space<vmem>>, vector<1x8x128xf32>,
    return
  }
  func.func @transform_1(%arg0: i32, %arg1: i32, %arg2: memref<16xi32, #tpu.memory_space<smem>>) -> (i32, i32, i32) {
    %c0_i32 = arith.constant 0 : i32
    %c0_i32_0 = arith.constant 0 : i32
    return %arg0, %arg1, %c0_i32 : i32, i32, i32
  }
}

</mosaic_0001>

<bundles_post_ra>
// kernel: tpu_custom_call.1
= control target key start
LH: loop header
LB: loop body
LE: loop exit
PB: predicated region body
PF: predicated region fallthrough
CT: control target
= control target key end

     0   :  { %s433_s12 = smov [#allocation5]   ;;  %s556_s0 = inlined_call_operand.hbm [shape: s32[16], index: 0, kind: input, shape index: {}]   ;;  %s557_s1 = inlined_call_operand.hbm [shape: f32[512,128], index: 1, kind: input, shape index: {}]   ;;  %s558_s2 = inlined_call_operand.hbm [shape: f32[2,8,128], index: 2, kind: output, shape index: {}]  }
   0x1   :  { %s8_s11 = sshll.u32 %s556_s0, 4  ;;  %s9_s11 = int_to_ptr.hbm [resolvable:$true] %s8_s11 }
   0x2   :  { %11 = dma.hbm_to_smem %s9_s11, 16, %s433_s12, [#allocation4] }
   0x3   :  { %401 = dma.done.wait [#allocation4], 16 }
   0x4   :  { %402 = vsyncadd [#allocation4], 4294967280 }
   0x5   :  { %14 = sfence }
   0x6   :  { %15 = vsyncpa [#allocation7], 0 }
   0x7   :  { %17 = vsyncpa [#allocation7 + $0x1], 0  ;;  %s453_s13 = smov 0   ;;  %s455_s14 = smov 0  }
   0x8   :  { %s457_s15 = smov 0   ;;  %s459_s16 = smov 0  }
   0x9 LB: > { %s32_s0 = sadd.s32 1, %s419_s15  ;;  %s240_s17 = sadd.s32 4294967295, %s423_s16   ;;  %s423_s16 = sphi %s459_s16, %s23_s16   ;;  %s419_s15 = sphi %s457_s15, %s563_s15   ;;  %s415_s14 = sphi %s455_s14, %s562_s14   ;;  %s411_s13 = sphi %s453_s13, %s561_s13  }
   0xa   : > { %p34_p0 = scmp.ge.s32.totalorder %s32_s0, 2  ;;  %p50_p1 = scmp.ne.s32.totalorder %s415_s14, %s411_s13 }
   0xb   : > { %s41_s18 = sadd.s32 1, %s415_s14  ;;  %p51_p2 = scmp.eq.s32.totalorder %s240_s17, 1 }
   0xc   : > { %s565_s0 = smov (%p34_p0, %s32_s0), 0  ;;  %p45_p3 = scmp.eq.s32.totalorder %s423_s16, 1 }
   0xd   : > { %s36_s19 = ssub.s32 %s419_s15, %s565_s0  ;;  %p483_p6 = por %p51_p2, %p50_p1 }
   0xe   : > { %p39_p4 = scmp.eq.s32.totalorder %s36_s19, 0  ;;  %p241_p5 = scmp.ne.s32.totalorder %s36_s19, 0 }
   0xf   : > { %p242_p8 = scmp.ge.s32.totalorder %s423_s16, 2 }
  0x10   : > { %s488_s21 = scalar_select %p39_p4, %s415_s14, %s41_s18  }
  0x11   : > { %p490_p7 = por %p241_p5, %p45_p3  ;;  %60 = sbr.rel (%p242_p8) target bundleno = 70 (0x46), region = 12 }
  0x12   : > { %s65_s23 = sand.u32 (!%p242_p8), 1, %s415_s14   ;;  %s244_s24 = sshll.u32 (!%p242_p8), %s419_s15, 3 }
  0x13   : > { %s499_s25 = sshll.u32 (!%p242_p8), %s65_s23, 3  ;;  %s502_s27 = smov (!%p242_p8), 0  }
  0x14   : > { %s67_s26 = scalar_lea.vmem (!%p242_p8), [#allocation6], %s499_s25 }
  0x16 LB: >> { %s77_s28 = sadd.s32 %s427_s27, %s244_s24  ;;  %s80_s30 = scalar_lea.vmem [#allocation2], %s427_s27  ;;  %s427_s27 = sphi %s502_s27, %s76_s27  }
  0x17   : >> { %s78_s29 = sld [smem:[#allocation5 + %s77_s28]]  ;;  %s511_s3 = sshll.u32 %s80_s30, 4  ;;  %s92_s3 = int_to_ptr.vmem [resolvable:$true] %s511_s3 }
  0x18   : >> { %s81_s8 = scalar_lea.sflag [#allocation3], %s427_s27  ;;  %s329_s17 = scalar_lea.hbm %s557_s1, 512 }
  0x1d   : >> { %s79_s6 = scalar_lea.hbm %s557_s1, %s78_s29 }
  0x1e   : >> { %s89_s7 = sshll.u32 %s79_s6, 4  ;;  %s90_s7 = int_to_ptr.hbm [resolvable:$true] %s89_s7 }
  0x1f   : >> { %s325_s9 = sshra.s32 %s90_s7, 4  ;;  %s326_s9 = int_to_ptr.hbm [resolvable:$true] %s325_s9 }
  0x20   : >> { %s327_s10 = scalar_lea.hbm %s326_s9, 1  ;;  %p330_p10 = scmp.lt.s32.totalorder %s326_s9, %s557_s1 }
  0x21   : >> { %p328_p9 = scmp.ne.s32.totalorder %s326_s9, %s327_s10  ;;  %p331_p11 = scmp.lt.s32.totalorder %s329_s17, %s327_s10 }
  0x23   : >> { %p332_p12 = por %p331_p11, %p330_p10 }
  0x25   : >> { %p333_p13 = pnand %p332_p12, %p328_p9 }
  0x27   : >> { %336 = shalt.err (!%p333_p13)  }
  0x28   : >> { %s337_s28 = sshra.s32 %s92_s3, 4  ;;  %s434_s30 = smov [#allocation2]   ;;  %s338_s28 = int_to_ptr.vmem [resolvable:$true] %s337_s28 }
  0x29   : >> { %s339_s29 = scalar_lea.vmem %s338_s28, 1  ;;  %s341_s4 = scalar_lea.vmem %s434_s30, 8 }
  0x2a   : >> { %p340_p0 = scmp.ne.s32.totalorder %s338_s28, %s339_s29  ;;  %p342_p1 = scmp.lt.s32.totalorder %s338_s28, [#allocation2] }
  0x2b   : >> { %p343_p2 = scmp.lt.s32.totalorder %s341_s4, %s339_s29 }
  0x2d   : >> { %p344_p3 = por %p343_p2, %p342_p1 }
  0x2f   : >> { %p345_p4 = pnand %p344_p3, %p340_p0 }
  0x31   : >> { %348 = shalt.err (!%p345_p4)  }
  0x32   : >> { %94 = dma.hbm_to_vmem [thread:$0]  %s90_s7, 16, %s92_s3, %s81_s8 }
  0x33   : >> { %s76_s27 = sadd.s32 1, %s427_s27  }
  0x34   : >> { %p73_p5 = scmp.ge.s32.totalorder %s76_s27, 8  }
  0x35   : > { %s429_s5 = smov (%p73_p5), 0  }
  0x36   : > { %75 = sbr.rel (!%p73_p5) target bundleno = 22 (0x16), region = 73 }
  0x3b LB: >> { %s101_s6 = scalar_lea.sflag [#allocation3], %s431_s5  ;;  %s431_s5 = sphi %s429_s5, %s100_s5  }
  0x3c   : >> { %403 = dma.done.wait %s101_s6, 16 }
  0x3d   : >> { %404 = vsyncadd %s101_s6, 4294967280  ;;  %s100_s5 = sadd.s32 1, %s431_s5  }
  0x3e   : >> { %p97_p8 = scmp.ge.s32.totalorder %s100_s5, 8  }
  0x3f   : > { %v104_v0 = vld [vmem:[#allocation2] sm:$0xff] (%p97_p8)  ;;  %s119_s27 = scalar_lea.hbm (%p97_p8), %s558_s2, %s244_s24  ;;  %s121_s8 = sshll.u32 (%p97_p8), %s67_s26, 4  ;;  %s122_s8 = int_to_ptr.vmem [resolvable:$true] %s121_s8 }
  0x40   : > { %99 = sbr.rel (!%p97_p8) target bundleno = 59 (0x3b), region = 84  ;;  %v105_v1 = vmul.f32 (%p97_p8), 11.313708, %v104_v0  ;;  %s123_s9 = sshll.u32 (%p97_p8), %s119_s27, 4  ;;  %s124_s9 = int_to_ptr.hbm [resolvable:$true] %s123_s9 }
  0x41   : > { %s108_s10 = scalar_lea.sflag (%p97_p8), [#allocation7], %s65_s23 }
  0x42   : > { %106 = vst [vmem:[%s67_s26] sm:$0xff] (%p97_p8), %v105_v1 }
  0x45   : > { %257 = dma.vmem_to_hbm [thread:$0]  (%p490_p7), %s122_s8, 128, %s124_s9, %s108_s10  }
  0x46 PF: > { %p263_p9 = scmp.ge.s32.totalorder %s423_s16, 1  ;;  %s135_s15 = sand.u32 1, %s411_s13  }
  0x47   : > { %s136_s24 = scalar_lea.sflag [#allocation7], %s135_s15 }
  0x48   : > { %p260_p10 = pnand %p263_p9, %p483_p6 }
  0x4a   : > { %p261_p11 = pneg %p260_p10 }
  0x4c   : > { %406 = dma.done.wait (%p261_p11), %s136_s24, 128  }
  0x4d   : > { %408 = vsyncadd (%p261_p11), %s136_s24, 4294967168  ;;  %s23_s16 = sadd.s32 1, %s423_s16   ;;  %s561_s13 = smov %s415_s14 }
  0x4e   : > { %p20_p12 = scmp.ge.s32.totalorder %s23_s16, 3   ;;  %s562_s14 = smov %s488_s21 }
  0x4f   : > { %s563_s15 = smov %s565_s0 }
  0x50   :  { %22 = sbr.rel (!%p20_p12) target bundleno = 9 (0x9), region = 95 }
  0x55   :  { %142 = vsyncpa [#allocation7], 1 }
  0x56   :  { %144 = vsyncpa [#allocation7 + $0x1], 1 }
  0x57   :  { %145 = vsyncmov [#allocation3] }
  0x5a   :  { %s146_s20 = vpop.sfrf %145 }
  0x5b   :  { %p249_p6 = scmp.ne.s32.totalorder %s146_s20, 0 }
  0x5d   :  { %150 = shalt.err (%p249_p6)  }
  0x5e   :  { %152 = vsyncmov [#allocation3 + $0x1] }
  0x61   :  { %s153_s22 = vpop.sfrf %152 }
  0x62   :  { %p250_p7 = scmp.ne.s32.totalorder %s153_s22, 0 }
  0x64   :  { %157 = shalt.err (%p250_p7)  }
  0x65   :  { %159 = vsyncmov [#allocation3 + $0x2] }
  0x68   :  { %s160_s23 = vpop.sfrf %159 }
  0x69   :  { %p251_p13 = scmp.ne.s32.totalorder %s160_s23, 0 }
  0x6b   :  { %164 = shalt.err (%p251_p13)  }
  0x6c   :  { %166 = vsyncmov [#allocation3 + $0x3] }
  0x6f   :  { %s167_s21 = vpop.sfrf %166 }
  0x70   :  { %p252_p0 = scmp.ne.s32.totalorder %s167_s21, 0 }
  0x72   :  { %171 = shalt.err (%p252_p0)  }
  0x73   :  { %173 = vsyncmov [#allocation3 + $0x4] }
  0x76   :  { %s174_s16 = vpop.sfrf %173 }
  0x77   :  { %p253_p1 = scmp.ne.s32.totalorder %s174_s16, 0 }
  0x79   :  { %178 = shalt.err (%p253_p1)  }
  0x7a   :  { %180 = vsyncmov [#allocation3 + $0x5] }
  0x7d   :  { %s181_s1 = vpop.sfrf %180 }
  0x7e   :  { %p254_p2 = scmp.ne.s32.totalorder %s181_s1, 0 }
  0x80   :  { %185 = shalt.err (%p254_p2)  }
  0x81   :  { %187 = vsyncmov [#allocation3 + $0x6] }
  0x84   :  { %s188_s2 = vpop.sfrf %187 }
  0x85   :  { %p255_p3 = scmp.ne.s32.totalorder %s188_s2, 0 }
  0x87   :  { %192 = shalt.err (%p255_p3)  }
  0x88   :  { %194 = vsyncmov [#allocation3 + $0x7] }
  0x8b   :  { %s195_s13 = vpop.sfrf %194 }
  0x8c   :  { %p256_p4 = scmp.ne.s32.totalorder %s195_s13, 0 }
  0x8e   :  { %199 = shalt.err (%p256_p4)  }

</bundles_post_ra>
